<compile_context>
chip_gen: v5e
topology: v5e:2x2
jax: 0.10.0
libtpu: 0.0.40
codegen_flags: <defaults>
</compile_context>

<pallas_src>
import jax
import jax.numpy as jnp
from jax import lax
from jax.experimental import pallas as pl
from jax.experimental.pallas import tpu as pltpu

NEG_SLOPE = 0.1
BN_EPS = 1e-5
LANE = 128


def _leaky(x):
    return jnp.where(x > 0, x, NEG_SLOPE * x)


def _round_up(x, m):
    return (x + m - 1) // m * m


def scdown_kernel(ee_ref, eeh_ref, eo_ref, eoh_ref, oe_ref, oo_ref,
                  dww_ref, b1_ref, pww_ref, b2_ref, o_ref):
    """Fused depthwise 3x3/s2 conv (+folded BN bias, LeakyReLU) + 1x1 conv (+bias, LeakyReLU).

    ee_ref  : (TH, Wo+1, Cin)  even-row / even-col parity plane rows [t*TH, t*TH+TH)
    eeh_ref : (1,  Wo+1, Cin)  even/even halo row t*TH+TH
    eo_ref  : (TH, Wo,   Cin)  even-row / odd-col plane
    eoh_ref : (1,  Wo,   Cin)  even/odd halo row
    oe_ref  : (TH, Wo+1, Cin)  odd-row / even-col plane
    oo_ref  : (TH, Wo,   Cin)  odd-row / odd-col plane
    dww_ref : (9, Cin)         depthwise 3x3 weights (kh*3+kw, c), BN1 scale folded in
    b1_ref  : (1, Cin)         folded BN1 bias
    pww_ref : (Cin, Cout)      1x1 conv weights (bf16), BN2 scale folded in
    b2_ref  : (1, Cout)        folded BN2 bias (f32)
    o_ref   : (TH, Wo, Cout)   output row tile (lane-dense channels)
    """
    TH, Wo, Cout = o_ref.shape
    Cin = ee_ref.shape[-1]

    w = dww_ref[...]                                   # (9, Cin), loaded once

    def wk(k):
        return w[k:k + 1].reshape(1, 1, Cin)

    # Single load per parity slab; the dcol=+1 / drow=+1 taps are slices of these
    # values (no extra shifted slab loads from HBM/VMEM refs).
    ee0 = ee_ref[...]                                  # (TH, Wo+1, Cin)
    eo0 = eo_ref[...]                                  # (TH, Wo,   Cin)
    oe0 = oe_ref[...]                                  # (TH, Wo+1, Cin)
    oo0 = oo_ref[...]                                  # (TH, Wo,   Cin)

    # "next output row" view of the even-row planes: body rows 1.. plus the 1-row halo.
    if TH > 1:
        ee1 = jnp.concatenate([ee0[1:], eeh_ref[...]], axis=0)   # (TH, Wo+1, Cin)
        eo1 = jnp.concatenate([eo0[1:], eoh_ref[...]], axis=0)   # (TH, Wo,   Cin)
    else:
        ee1 = eeh_ref[...]
        eo1 = eoh_ref[...]

    # 3x3 stride-2 depthwise conv on parity planes:
    #   tap (kh,kw) -> plane[(kh%2, kw%2)] at row h+kh//2, col w+kw//2
    acc = ee0[:, :Wo, :] * wk(0)
    acc = acc + eo0 * wk(1)
    acc = acc + ee0[:, 1:, :] * wk(2)
    acc = acc + oe0[:, :Wo, :] * wk(3)
    acc = acc + oo0 * wk(4)
    acc = acc + oe0[:, 1:, :] * wk(5)
    acc = acc + ee1[:, :Wo, :] * wk(6)
    acc = acc + eo1 * wk(7)
    acc = acc + ee1[:, 1:, :] * wk(8)

    # BN1 bias (scale already folded into w) + LeakyReLU
    y = _leaky(acc + b1_ref[...].reshape(1, 1, Cin))

    # 1x1 conv over channels == lane-dense MXU matmul; bf16 inputs, f32 accumulate.
    y = y.astype(pww_ref.dtype)
    z = jnp.dot(y.reshape(TH * Wo, Cin), pww_ref[...],
                preferred_element_type=jnp.float32)

    # BN2 bias + LeakyReLU, unmasked lane-dense store.
    z = _leaky(z + b2_ref[...])
    o_ref[...] = z.reshape(TH, Wo, Cout).astype(o_ref.dtype)


def _pick_block_h(Ho, Wo, target_m=2048):
    """Row-tile height: M = TH*Wo around ~2K, TH preferably a multiple of 8."""
    th = max(1, target_m // max(Wo, 1))
    if th >= Ho:
        return Ho
    if th >= 8:
        th -= th % 8           # keep the (TH*Wo, C) reshape sublane-friendly
    return max(1, min(th, Ho))


def scdown_forward_nhwc(x_nhwc, params, *, block_h=None, tap_dtype=jnp.float32):
    """NHWC-in / NHWC-out SCDown forward (eval-mode BN folded into the conv weights).

    Set tap_dtype=jnp.bfloat16 on v6e/v7x to halve the VALU-bound tap chain and the
    parity-plane DMA traffic; keep f32 on v5e (no bf16 VPU).
    """
    (dw_w, g1, bt1, m1, v1, pw_w, g2, bt2, m2, v2) = params
    B, H, W, Cin = x_nhwc.shape
    Cout = pw_w.shape[0]
    Ho = (H + 2 - 3) // 2 + 1
    Wo = (W + 2 - 3) // 2 + 1

    # ---- fold BN (eval mode) into the conv weights; only biases go to the kernel ----
    inv1 = g1 / jnp.sqrt(v1 + BN_EPS)
    inv2 = g2 / jnp.sqrt(v2 + BN_EPS)
    dww = jnp.transpose(dw_w[:, 0], (1, 2, 0)).reshape(9, Cin) * inv1[None, :]
    b1 = bt1 - m1 * inv1
    pww = jnp.transpose(pw_w[:, :, 0, 0], (1, 0)) * inv2[None, :]
    b2 = bt2 - m2 * inv2

    # ---- lane-dense channel padding (no-op for real SCDown widths >= 128) ----
    Cp_in = _round_up(Cin, LANE)
    Cp_out = _round_up(Cout, LANE)
    dww_p = jnp.pad(dww, ((0, 0), (0, Cp_in - Cin))).astype(tap_dtype)
    b1_p = jnp.pad(b1, (0, Cp_in - Cin)).reshape(1, Cp_in).astype(tap_dtype)
    pww_p = jnp.pad(pww, ((0, Cp_in - Cin), (0, Cp_out - Cout))).astype(jnp.bfloat16)
    b2_p = jnp.pad(b2, (0, Cp_out - Cout)).reshape(1, Cp_out)          # f32

    # ---- tile size + row padding (handles Ho not divisible by TH) ----
    TH = block_h if block_h is not None else _pick_block_h(Ho, Wo)
    TH = max(1, min(TH, Ho))
    n_t = pl.cdiv(Ho, TH)
    Ho_pad = n_t * TH

    # ---- zero-pad, pixel-unshuffle into parity planes ----
    # TODO(synk): fold the pad + unshuffle into the producing kernel for a fully fused
    # NHWC pipeline instead of materializing the planes here.
    pad_b = 2 * Ho_pad - H       # top pad 1 -> padded height = 2*Ho_pad + 1
    pad_r = 2 * Wo - W           # left pad 1 -> padded width  = 2*Wo + 1
    xp = jnp.pad(x_nhwc, ((0, 0), (1, pad_b), (1, pad_r), (0, Cp_in - Cin)))
    ee = xp[:, 0::2, 0::2, :].astype(tap_dtype)   # (B, Ho_pad+1, Wo+1, Cp_in)
    eo = xp[:, 0::2, 1::2, :].astype(tap_dtype)   # (B, Ho_pad+1, Wo,   Cp_in)
    oe = xp[:, 1::2, 0::2, :].astype(tap_dtype)   # (B, Ho_pad,   Wo+1, Cp_in)
    oo = xp[:, 1::2, 1::2, :].astype(tap_dtype)   # (B, Ho_pad,   Wo,   Cp_in)

    # ---- VMEM budget: size the scoped limit from the actual block footprint ----
    itm = jnp.dtype(tap_dtype).itemsize
    plane_blk = TH * (Wo + 1) * Cp_in * itm
    halo_blk = (Wo + 1) * Cp_in * itm
    out_blk = TH * Wo * Cp_out * 4
    wgt = 10 * Cp_in * itm + Cp_in * Cp_out * 2 + Cp_out * 4
    est = 2 * (4 * plane_blk + 2 * halo_blk + out_blk + wgt)       # double-buffered
    est += 6 * TH * (Wo + 1) * Cp_in * 4 + 2 * TH * Wo * Cp_out * 4  # in-kernel temps
    vmem_limit = int(min(64 << 20, max(32 << 20, 2 * est)))

    # TODO(synk): mark the weight/bias BlockSpecs pipeline_mode=pl.Buffered(1) (their
    # block index never changes) to shave their second buffer on v7x.
    in_specs = [
        pl.BlockSpec((None, TH, Wo + 1, Cp_in), lambda b, t: (b, t, 0, 0)),            # ee body
        pl.BlockSpec((None, 1, Wo + 1, Cp_in), lambda b, t: (b, (t + 1) * TH, 0, 0)),   # ee halo
        pl.BlockSpec((None, TH, Wo, Cp_in), lambda b, t: (b, t, 0, 0)),                 # eo body
        pl.BlockSpec((None, 1, Wo, Cp_in), lambda b, t: (b, (t + 1) * TH, 0, 0)),       # eo halo
        pl.BlockSpec((None, TH, Wo + 1, Cp_in), lambda b, t: (b, t, 0, 0)),             # oe
        pl.BlockSpec((None, TH, Wo, Cp_in), lambda b, t: (b, t, 0, 0)),                 # oo
        pl.BlockSpec((9, Cp_in), lambda b, t: (0, 0)),                                  # dww
        pl.BlockSpec((1, Cp_in), lambda b, t: (0, 0)),                                  # b1
        pl.BlockSpec((Cp_in, Cp_out), lambda b, t: (0, 0)),                             # pww
        pl.BlockSpec((1, Cp_out), lambda b, t: (0, 0)),                                 # b2
    ]

    out_padded = pl.pallas_call(
        scdown_kernel,
        out_shape=jax.ShapeDtypeStruct((B, Ho_pad, Wo, Cp_out), x_nhwc.dtype),
        grid=(B, n_t),
        in_specs=in_specs,
        out_specs=pl.BlockSpec((None, TH, Wo, Cp_out), lambda b, t: (b, t, 0, 0)),
        compiler_params=pltpu.CompilerParams(
            dimension_semantics=("parallel", "parallel"),
            vmem_limit_bytes=vmem_limit),
    )(ee, ee, eo, eo, oe, oo, dww_p, b1_p, pww_p, b2_p)

    # slice away row/channel padding
    return out_padded[:, :Ho, :, :Cout]


def scdown_forward(x_nchw, params, *, block_h=None, tap_dtype=jnp.float32):
    """NCHW wrapper matching the PyTorch interface."""
    # TODO(synk): in a full NHWC pipeline call scdown_forward_nhwc directly and skip
    # these two transposes (each adds an HBM round trip to a memory-bound op).
    x_nhwc = jnp.transpose(x_nchw, (0, 2, 3, 1))
    out_nhwc = scdown_forward_nhwc(x_nhwc, params, block_h=block_h, tap_dtype=tap_dtype)
    return jnp.transpose(out_nhwc, (0, 3, 1, 2))


def reference_forward(x_nchw, params):
    """Pure-JAX reference (eval-mode BN), mirrors the PyTorch module."""
    (dw_w, g1, bt1, m1, v1, pw_w, g2, bt2, m2, v2) = params
    Cin = x_nchw.shape[1]

    y = lax.conv_general_dilated(
        x_nchw, dw_w, window_strides=(2, 2), padding=((1, 1), (1, 1)),
        dimension_numbers=("NCHW", "OIHW", "NCHW"), feature_group_count=Cin)
    y = (y - m1[None, :, None, None]) / jnp.sqrt(v1 + BN_EPS)[None, :, None, None]
    y = y * g1[None, :, None, None] + bt1[None, :, None, None]
    y = _leaky(y)

    z = lax.conv_general_dilated(
        y, pw_w, window_strides=(1, 1), padding=((0, 0), (0, 0)),
        dimension_numbers=("NCHW", "OIHW", "NCHW"))
    z = (z - m2[None, :, None, None]) / jnp.sqrt(v2 + BN_EPS)[None, :, None, None]
    z = z * g2[None, :, None, None] + bt2[None, :, None, None]
    z = _leaky(z)
    return z


def init_params(key, in_channels, out_channels):
    ks = jax.random.split(key, 10)
    dw_w = 0.2 * jax.random.normal(ks[0], (in_channels, 1, 3, 3), jnp.float32)
    pw_w = 0.2 * jax.random.normal(ks[1], (out_channels, in_channels, 1, 1), jnp.float32)
    g1 = jax.random.uniform(ks[2], (in_channels,), jnp.float32, 0.5, 1.5)
    bt1 = 0.1 * jax.random.normal(ks[3], (in_channels,), jnp.float32)
    m1 = 0.1 * jax.random.normal(ks[4], (in_channels,), jnp.float32)
    v1 = jax.random.uniform(ks[5], (in_channels,), jnp.float32, 0.5, 1.5)
    g2 = jax.random.uniform(ks[6], (out_channels,), jnp.float32, 0.5, 1.5)
    bt2 = 0.1 * jax.random.normal(ks[7], (out_channels,), jnp.float32)
    m2 = 0.1 * jax.random.normal(ks[8], (out_channels,), jnp.float32)
    v2 = jax.random.uniform(ks[9], (out_channels,), jnp.float32, 0.5, 1.5)
    return (dw_w, g1, bt1, m1, v1, pw_w, g2, bt2, m2, v2)


if __name__ == "__main__":
    B, Cin, H, W = 2, 4, 16, 16
    Cout = 8

    key = jax.random.PRNGKey(0)
    kx, kp = jax.random.split(key)
    x = jax.random.normal(kx, (B, Cin, H, W), jnp.float32)
    params = init_params(kp, Cin, Cout)

    ref = jax.block_until_ready(reference_forward(x, params))

    # Default tile (single row tile at this toy resolution).
    out = jax.block_until_ready(scdown_forward(x, params))
    assert out.shape == ref.shape == (B, Cout, H // 2, W // 2)
    err = jnp.max(jnp.abs(out - ref))
    assert jnp.allclose(out, ref, atol=1e-2, rtol=1e-2), f"max abs err = {err}"

    # Multi-tile path: Ho=8 with TH=3 exercises the halo rows and the padded last tile.
    out2 = jax.block_until_ready(scdown_forward(x, params, block_h=3))
    err2 = jnp.max(jnp.abs(out2 - ref))
    assert jnp.allclose(out2, ref, atol=1e-2, rtol=1e-2), f"max abs err = {err2}"

    print("KERNEL_OK")
</pallas_src>

<mosaic_0001>
module attributes {stable_mosaic.version = 11 : i64} {
  func.func @scdown_kernel(%arg0: i32, %arg1: i32, %arg2: memref<1x8x9x128xf32, #tpu.memory_space<vmem>>, %arg3: memref<1x1x9x128xf32, #tpu.memory_space<vmem>>, %arg4: memref<1x8x8x128xf32, #tpu.memory_space<vmem>>, %arg5: memref<1x1x8x128xf32, #tpu.memory_space<vmem>>, %arg6: memref<1x8x9x128xf32, #tpu.memory_space<vmem>>, %arg7: memref<1x8x8x128xf32, #tpu.memory_space<vmem>>, %arg8: memref<9x128xf32, #tpu.memory_space<vmem>>, %arg9: memref<1x128xf32, #tpu.memory_space<vmem>>, %arg10: memref<128x128xbf16, #tpu.memory_space<vmem>>, %arg11: memref<1x128xf32, #tpu.memory_space<vmem>>, %arg12: memref<1x8x8x128xf32, #tpu.memory_space<vmem>>) attributes {dimension_semantics = [#tpu.dimension_semantics<parallel>, #tpu.dimension_semantics<parallel>], iteration_bounds = array<i64: 2, 1>, scalar_prefetch = 0 : i64, scratch_operands = 0 : i64, tpu.core_type = #tpu.core_type<tc>, window_params = [{transform_indices = @transform_0, window_bounds = array<i64: 1, 8, 9, 128>}, {transform_indices = @transform_1, window_bounds = array<i64: 1, 1, 9, 128>}, {transform_indices = @transform_2, window_bounds = array<i64: 1, 8, 8, 128>}, {transform_indices = @transform_3, window_bounds = array<i64: 1, 1, 8, 128>}, {transform_indices = @transform_4, window_bounds = array<i64: 1, 8, 9, 128>}, {transform_indices = @transform_5, window_bounds = array<i64: 1, 8, 8, 128>}, {pipeline_mode = #tpu.pipeline_mode<synchronous>, transform_indices = @transform_6, window_bounds = array<i64: 9, 128>}, {pipeline_mode = #tpu.pipeline_mode<synchronous>, transform_indices = @transform_7, window_bounds = array<i64: 1, 128>}, {pipeline_mode = #tpu.pipeline_mode<synchronous>, transform_indices = @transform_8, window_bounds = array<i64: 128, 128>}, {pipeline_mode = #tpu.pipeline_mode<synchronous>, transform_indices = @transform_9, window_bounds = array<i64: 1, 128>}, {transform_indices = @transform_10, window_bounds = array<i64: 1, 8, 8, 128>}]} {
    %c0 = arith.constant 0 : index
    %c0_0 = arith.constant 0 : index
    %0 = vector.load %arg8[%c0, %c0_0] : memref<9x128xf32, #tpu.memory_space<vmem>>, vector<9x128xf32>
    %c0_1 = arith.constant 0 : index
    %c0_2 = arith.constant 0 : index
    %c0_3 = arith.constant 0 : index
    %c0_4 = arith.constant 0 : index
    %1 = vector.load %arg2[%c0_1, %c0_2, %c0_3, %c0_4] : memref<1x8x9x128xf32, #tpu.memory_space<vmem>>, vector<1x8x9x128xf32>
    %2 = vector.shape_cast %1 : vector<1x8x9x128xf32> to vector<8x9x128xf32>
    %c0_5 = arith.constant 0 : index
    %c0_6 = arith.constant 0 : index
    %c0_7 = arith.constant 0 : index
    %c0_8 = arith.constant 0 : index
    %3 = vector.load %arg4[%c0_5, %c0_6, %c0_7, %c0_8] : memref<1x8x8x128xf32, #tpu.memory_space<vmem>>, vector<1x8x8x128xf32>
    %4 = vector.shape_cast %3 : vector<1x8x8x128xf32> to vector<8x8x128xf32>
    %c0_9 = arith.constant 0 : index
    %c0_10 = arith.constant 0 : index
    %c0_11 = arith.constant 0 : index
    %c0_12 = arith.constant 0 : index
    %5 = vector.load %arg6[%c0_9, %c0_10, %c0_11, %c0_12] : memref<1x8x9x128xf32, #tpu.memory_space<vmem>>, vector<1x8x9x128xf32>
    %6 = vector.shape_cast %5 : vector<1x8x9x128xf32> to vector<8x9x128xf32>
    %c0_13 = arith.constant 0 : index
    %c0_14 = arith.constant 0 : index
    %c0_15 = arith.constant 0 : index
    %c0_16 = arith.constant 0 : index
    %7 = vector.load %arg7[%c0_13, %c0_14, %c0_15, %c0_16] : memref<1x8x8x128xf32, #tpu.memory_space<vmem>>, vector<1x8x8x128xf32>
    %8 = vector.shape_cast %7 : vector<1x8x8x128xf32> to vector<8x8x128xf32>
    %9 = vector.extract_strided_slice %2 {offsets = [1, 0, 0], sizes = [7, 9, 128], strides = [1, 1, 1]} : vector<8x9x128xf32> to vector<7x9x128xf32>
    %c0_17 = arith.constant 0 : index
    %c0_18 = arith.constant 0 : index
    %c0_19 = arith.constant 0 : index
    %c0_20 = arith.constant 0 : index
    %10 = vector.load %arg3[%c0_17, %c0_18, %c0_19, %c0_20] : memref<1x1x9x128xf32, #tpu.memory_space<vmem>>, vector<1x1x9x128xf32>
    %11 = vector.shape_cast %10 : vector<1x1x9x128xf32> to vector<1x9x128xf32>
    %12 = tpu.concatenate %9, %11 in 0 : vector<7x9x128xf32>, vector<1x9x128xf32> -> vector<8x9x128xf32>
    %13 = vector.extract_strided_slice %4 {offsets = [1, 0, 0], sizes = [7, 8, 128], strides = [1, 1, 1]} : vector<8x8x128xf32> to vector<7x8x128xf32>
    %c0_21 = arith.constant 0 : index
    %c0_22 = arith.constant 0 : index
    %c0_23 = arith.constant 0 : index
    %c0_24 = arith.constant 0 : index
    %14 = vector.load %arg5[%c0_21, %c0_22, %c0_23, %c0_24] : memref<1x1x8x128xf32, #tpu.memory_space<vmem>>, vector<1x1x8x128xf32>
    %15 = vector.shape_cast %14 : vector<1x1x8x128xf32> to vector<1x8x128xf32>
    %16 = tpu.concatenate %13, %15 in 0 : vector<7x8x128xf32>, vector<1x8x128xf32> -> vector<8x8x128xf32>
    %17 = vector.extract_strided_slice %2 {offsets = [0, 0, 0], sizes = [8, 8, 128], strides = [1, 1, 1]} : vector<8x9x128xf32> to vector<8x8x128xf32>
    %18 = vector.extract_strided_slice %0 {offsets = [0, 0], sizes = [1, 128], strides = [1, 1]} : vector<9x128xf32> to vector<1x128xf32>
    %19 = vector.shape_cast %18 : vector<1x128xf32> to vector<1x1x128xf32>
    %20 = vector.broadcast %19 : vector<1x1x128xf32> to vector<8x8x128xf32>
    %21 = arith.mulf %17, %20 : vector<8x8x128xf32>
    %22 = vector.extract_strided_slice %0 {offsets = [1, 0], sizes = [1, 128], strides = [1, 1]} : vector<9x128xf32> to vector<1x128xf32>
    %23 = vector.shape_cast %22 : vector<1x128xf32> to vector<1x1x128xf32>
    %24 = vector.broadcast %23 : vector<1x1x128xf32> to vector<8x8x128xf32>
    %25 = arith.mulf %4, %24 : vector<8x8x128xf32>
    %26 = arith.addf %21, %25 : vector<8x8x128xf32>
    %27 = vector.extract_strided_slice %2 {offsets = [0, 1, 0], sizes = [8, 8, 128], strides = [1, 1, 1]} : vector<8x9x128xf32> to vector<8x8x128xf32>
    %28 = vector.extract_strided_slice %0 {offsets = [2, 0], sizes = [1, 128], strides = [1, 1]} : vector<9x128xf32> to vector<1x128xf32>
    %29 = vector.shape_cast %28 : vector<1x128xf32> to vector<1x1x128xf32>
    %30 = vector.broadcast %29 : vector<1x1x128xf32> to vector<8x8x128xf32>
    %31 = arith.mulf %27, %30 : vector<8x8x128xf32>
    %32 = arith.addf %26, %31 : vector<8x8x128xf32>
    %33 = vector.extract_strided_slice %6 {offsets = [0, 0, 0], sizes = [8, 8, 128], strides = [1, 1, 1]} : vector<8x9x128xf32> to vector<8x8x128xf32>
    %34 = vector.extract_strided_slice %0 {offsets = [3, 0], sizes = [1, 128], strides = [1, 1]} : vector<9x128xf32> to vector<1x128xf32>
    %35 = vector.shape_cast %34 : vector<1x128xf32> to vector<1x1x128xf32>
    %36 = vector.broadcast %35 : vector<1x1x128xf32> to vector<8x8x128xf32>
    %37 = arith.mulf %33, %36 : vector<8x8x128xf32>
    %38 = arith.addf %32, %37 : vector<8x8x128xf32>
    %39 = vector.extract_strided_slice %0 {offsets = [4, 0], sizes = [1, 128], strides = [1, 1]} : vector<9x128xf32> to vector<1x128xf32>
    %40 = vector.shape_cast %39 : vector<1x128xf32> to vector<1x1x128xf32>
    %41 = vector.broadcast %40 : vector<1x1x128xf32> to vector<8x8x128xf32>
    %42 = arith.mulf %8, %41 : vector<8x8x128xf32>
    %43 = arith.addf %38, %42 : vector<8x8x128xf32>
    %44 = vector.extract_strided_slice %6 {offsets = [0, 1, 0], sizes = [8, 8, 128], strides = [1, 1, 1]} : vector<8x9x128xf32> to vector<8x8x128xf32>
    %45 = vector.extract_strided_slice %0 {offsets = [5, 0], sizes = [1, 128], strides = [1, 1]} : vector<9x128xf32> to vector<1x128xf32>
    %46 = vector.shape_cast %45 : vector<1x128xf32> to vector<1x1x128xf32>
    %47 = vector.broadcast %46 : vector<1x1x128xf32> to vector<8x8x128xf32>
    %48 = arith.mulf %44, %47 : vector<8x8x128xf32>
    %49 = arith.addf %43, %48 : vector<8x8x128xf32>
    %50 = vector.extract_strided_slice %12 {offsets = [0, 0, 0], sizes = [8, 8, 128], strides = [1, 1, 1]} : vector<8x9x128xf32> to vector<8x8x128xf32>
    %51 = vector.extract_strided_slice %0 {offsets = [6, 0], sizes = [1, 128], strides = [1, 1]} : vector<9x128xf32> to vector<1x128xf32>
    %52 = vector.shape_cast %51 : vector<1x128xf32> to vector<1x1x128xf32>
    %53 = vector.broadcast %52 : vector<1x1x128xf32> to vector<8x8x128xf32>
    %54 = arith.mulf %50, %53 : vector<8x8x128xf32>
    %55 = arith.addf %49, %54 : vector<8x8x128xf32>
    %56 = vector.extract_strided_slice %0 {offsets = [7, 0], sizes = [1, 128], strides = [1, 1]} : vector<9x128xf32> to vector<1x128xf32>
    %57 = vector.shape_cast %56 : vector<1x128xf32> to vector<1x1x128xf32>
    %58 = vector.broadcast %57 : vector<1x1x128xf32> to vector<8x8x128xf32>
    %59 = arith.mulf %16, %58 : vector<8x8x128xf32>
    %60 = arith.addf %55, %59 : vector<8x8x128xf32>
    %61 = vector.extract_strided_slice %12 {offsets = [0, 1, 0], sizes = [8, 8, 128], strides = [1, 1, 1]} : vector<8x9x128xf32> to vector<8x8x128xf32>
    %62 = vector.extract_strided_slice %0 {offsets = [8, 0], sizes = [1, 128], strides = [1, 1]} : vector<9x128xf32> to vector<1x128xf32>
    %63 = vector.shape_cast %62 : vector<1x128xf32> to vector<1x1x128xf32>
    %64 = vector.broadcast %63 : vector<1x1x128xf32> to vector<8x8x128xf32>
    %65 = arith.mulf %61, %64 : vector<8x8x128xf32>
    %66 = arith.addf %60, %65 : vector<8x8x128xf32>
    %c0_25 = arith.constant 0 : index
    %c0_26 = arith.constant 0 : index
    %67 = vector.load %arg9[%c0_25, %c0_26] : memref<1x128xf32, #tpu.memory_space<vmem>>, vector<1x128xf32>
    %68 = vector.shape_cast %67 : vector<1x128xf32> to vector<1x1x128xf32>
    %69 = vector.broadcast %68 : vector<1x1x128xf32> to vector<8x8x128xf32>
    %70 = arith.addf %66, %69 : vector<8x8x128xf32>
    %cst = arith.constant 0.000000e+00 : f32
    %71 = vector.broadcast %cst : f32 to vector<8x8x128xf32>
    %72 = arith.cmpf ogt, %70, %71 : vector<8x8x128xf32>
    %cst_27 = arith.constant 1.000000e-01 : f32
    %73 = vector.broadcast %cst_27 : f32 to vector<8x8x128xf32>
    %74 = arith.mulf %73, %70 : vector<8x8x128xf32>
    %75 = arith.select %72, %70, %74 : vector<8x8x128xi1>, vector<8x8x128xf32>
    %76 = arith.truncf %75 : vector<8x8x128xf32> to vector<8x8x128xbf16>
    %77 = vector.shape_cast %76 : vector<8x8x128xbf16> to vector<64x128xbf16>
    %c0_28 = arith.constant 0 : index
    %c0_29 = arith.constant 0 : index
    %78 = vector.load %arg10[%c0_28, %c0_29] : memref<128x128xbf16, #tpu.memory_space<vmem>>, vector<128x128xbf16>
    %cst_30 = arith.constant dense<0.000000e+00> : vector<64x128xf32>
    %79 = tpu.matmul %77, %78, %cst_30 {dimension_numbers = #tpu.dot_dimension_numbers<[1], [0], [0], [1], [0, 0, 1, 1], [], []>} : vector<64x128xbf16>, vector<128x128xbf16>, vector<64x128xf32> -> vector<64x128xf32>
    %c0_31 = arith.constant 0 : index
    %c0_32 = arith.constant 0 : index
    %80 = vector.load %arg11[%c0_31, %c0_32] : memref<1x128xf32, #tpu.memory_space<vmem>>, vector<1x128xf32>
    %81 = vector.broadcast %80 : vector<1x128xf32> to vector<64x128xf32>
    %82 = arith.addf %79, %81 : vector<64x128xf32>
    %cst_33 = arith.constant 0.000000e+00 : f32
    %83 = vector.broadcast %cst_33 : f32 to vector<64x128xf32>
    %84 = arith.cmpf ogt, %82, %83 : vector<64x128xf32>
    %cst_34 = arith.constant 1.000000e-01 : f32
    %85 = vector.broadcast %cst_34 : f32 to vector<64x128xf32>
    %86 = arith.mulf %85, %82 : vector<64x128xf32>
    %87 = arith.select %84, %82, %86 : vector<64x128xi1>, vector<64x128xf32>
    %88 = vector.shape_cast %87 : vector<64x128xf32> to vector<8x8x128xf32>
    %c0_35 = arith.constant 0 : index
    %c0_36 = arith.constant 0 : index
    %c0_37 = arith.constant 0 : index
    %c0_38 = arith.constant 0 : index
    %89 = vector.load %arg12[%c0_35, %c0_36, %c0_37, %c0_38] : memref<1x8x8x128xf32, #tpu.memory_space<vmem>>, vector<1x8x8x128xf32>
    %90 = vector.shape_cast %89 : vector<1x8x8x128xf32> to vector<8x8x128xf32>
    %91 = vector.shape_cast %88 : vector<8x8x128xf32> to vector<1x8x8x128xf32>
    tpu.vector_store %arg12[%c0_35, %c0_36, %c0_37, %c0_38], %91 {strides = array<i32>} : memref<1x8x8x128xf32, #tpu.memory_space<vmem>>, vector<1x8x8x128xf32>,
    return
  }
  func.func @transform_0(%arg0: i32, %arg1: i32) -> (i32, i32, i32, i32) {
    %c0_i32 = arith.constant 0 : i32
    %c0_i32_0 = arith.constant 0 : i32
    %c0_i32_1 = arith.constant 0 : i32
    return %arg0, %arg1, %c0_i32, %c0_i32_0 : i32, i32, i32, i32
  }
  func.func @transform_1(%arg0: i32, %arg1: i32) -> (i32, i32, i32, i32) {
    %c1_i32 = arith.constant 1 : i32
    %0 = arith.addi %arg1, %c1_i32 : i32
    %c8_i32 = arith.constant 8 : i32
    %1 = arith.muli %0, %c8_i32 : i32
    %c0_i32 = arith.constant 0 : i32
    %c0_i32_0 = arith.constant 0 : i32
    %c0_i32_1 = arith.constant 0 : i32
    return %arg0, %1, %c0_i32, %c0_i32_0 : i32, i32, i32, i32
  }
  func.func @transform_2(%arg0: i32, %arg1: i32) -> (i32, i32, i32, i32) {
    %c0_i32 = arith.constant 0 : i32
    %c0_i32_0 = arith.constant 0 : i32
    %c0_i32_1 = arith.constant 0 : i32
    return %arg0, %arg1, %c0_i32, %c0_i32_0 : i32, i32, i32, i32
  }
  func.func @transform_3(%arg0: i32, %arg1: i32) -> (i32, i32, i32, i32) {
    %c1_i32 = arith.constant 1 : i32
    %0 = arith.addi %arg1, %c1_i32 : i32
    %c8_i32 = arith.constant 8 : i32
    %1 = arith.muli %0, %c8_i32 : i32
    %c0_i32 = arith.constant 0 : i32
    %c0_i32_0 = arith.constant 0 : i32
    %c0_i32_1 = arith.constant 0 : i32
    return %arg0, %1, %c0_i32, %c0_i32_0 : i32, i32, i32, i32
  }
  func.func @transform_4(%arg0: i32, %arg1: i32) -> (i32, i32, i32, i32) {
    %c0_i32 = arith.constant 0 : i32
    %c0_i32_0 = arith.constant 0 : i32
    %c0_i32_1 = arith.constant 0 : i32
    return %arg0, %arg1, %c0_i32, %c0_i32_0 : i32, i32, i32, i32
  }
  func.func @transform_5(%arg0: i32, %arg1: i32) -> (i32, i32, i32, i32) {
    %c0_i32 = arith.constant 0 : i32
    %c0_i32_0 = arith.constant 0 : i32
    %c0_i32_1 = arith.constant 0 : i32
    return %arg0, %arg1, %c0_i32, %c0_i32_0 : i32, i32, i32, i32
  }
  func.func @transform_6(%arg0: i32, %arg1: i32) -> (i32, i32) {
    %c0_i32 = arith.constant 0 : i32
    %c0_i32_0 = arith.constant 0 : i32
    %c0_i32_1 = arith.constant 0 : i32
    return %c0_i32, %c0_i32_0 : i32, i32
  }
  func.func @transform_7(%arg0: i32, %arg1: i32) -> (i32, i32) {
    %c0_i32 = arith.constant 0 : i32
    %c0_i32_0 = arith.constant 0 : i32
    %c0_i32_1 = arith.constant 0 : i32
    return %c0_i32, %c0_i32_0 : i32, i32
  }
  func.func @transform_8(%arg0: i32, %arg1: i32) -> (i32, i32) {
    %c0_i32 = arith.constant 0 : i32
    %c0_i32_0 = arith.constant 0 : i32
    %c0_i32_1 = arith.constant 0 : i32
    return %c0_i32, %c0_i32_0 : i32, i32
  }
  func.func @transform_9(%arg0: i32, %arg1: i32) -> (i32, i32) {
    %c0_i32 = arith.constant 0 : i32
    %c0_i32_0 = arith.constant 0 : i32
    %c0_i32_1 = arith.constant 0 : i32
    return %c0_i32, %c0_i32_0 : i32, i32
  }
  func.func @transform_10(%arg0: i32, %arg1: i32) -> (i32, i32, i32, i32) {
    %c0_i32 = arith.constant 0 : i32
    %c0_i32_0 = arith.constant 0 : i32
    %c0_i32_1 = arith.constant 0 : i32
    return %arg0, %arg1, %c0_i32, %c0_i32_0 : i32, i32, i32, i32
  }
}

</mosaic_0001>

<bundles_post_ra>
// kernel: tpu_custom_call.1
= control target key start
LH: loop header
LB: loop body
LE: loop exit
PB: predicated region body
PF: predicated region fallthrough
CT: control target
= control target key end

     0   :  { %15 = vsyncpa [#allocation3], 0  ;;  %s2202_s0 = inlined_call_operand.vmem [shape: f32[2,9,9,128], index: 0, kind: input, shape index: {}]   ;;  %s2203_s1 = inlined_call_operand.vmem [shape: f32[2,9,9,128], index: 1, kind: input, shape index: {}]   ;;  %s2204_s2 = inlined_call_operand.vmem [shape: f32[2,9,8,128], index: 2, kind: input, shape index: {}]   ;;  %s2205_s3 = inlined_call_operand.vmem [shape: f32[2,9,8,128], index: 3, kind: input, shape index: {}]   ;;  %s2206_s4 = inlined_call_operand.vmem [shape: f32[2,8,9,128], index: 4, kind: input, shape index: {}]   ;;  %s2207_s5 = inlined_call_operand.vmem [shape: f32[2,8,8,128], index: 5, kind: input, shape index: {}]   ;;  %s2208_s6 = inlined_call_operand.vmem [shape: f32[9,128], index: 6, kind: input, shape index: {}]   ;;  %s2209_s7 = inlined_call_operand.vmem [shape: f32[1,128], index: 7, kind: input, shape index: {}]   ;;  %s2210_s8 = inlined_call_operand.vmem [shape: bf16[128,128], index: 8, kind: input, shape index: {}]   ;;  %s2211_s9 = inlined_call_operand.vmem [shape: f32[1,128], index: 9, kind: input, shape index: {}]   ;;  %s2212_s10 = inlined_call_operand.hbm [shape: f32[2,8,8,128], index: 10, kind: output, shape index: {}]  }
   0x1   :  { %17 = vsyncpa [#allocation3 + $0x1], 0  ;;  %s1694_s13 = smov 0   ;;  %s1696_s14 = smov 0  }
   0x2   :  { %s1698_s15 = smov 0   ;;  %s1700_s16 = smov 0  }
   0x3   :  { %s1702_s17 = smov 0   ;;  %s1704_s18 = smov 0  }
   0x4 LB: > { %s1401_s19 = sadd.s32 4294967295, %s1635_s18   ;;  %s1402_s20 = sadd.s32 4294967294, %s1635_s18   ;;  %s1635_s18 = sphi %s1704_s18, %s23_s18   ;;  %s1631_s17 = sphi %s1702_s17, %s2224_s17   ;;  %s1627_s16 = sphi %s1700_s16, %s2223_s16   ;;  %s1623_s15 = sphi %s1698_s15, %s2222_s15   ;;  %s1619_s14 = sphi %s1696_s14, %s2221_s14   ;;  %s1615_s13 = sphi %s1694_s13, %s2220_s13  }
   0x5   : > { %s35_s21 = sadd.s32 1, %s1631_s17  ;;  %s304_s22 = sadd.s32 1, %s1623_s15 }
   0x6   : > { %p37_p0 = scmp.ge.s32.totalorder %s35_s21, 2  ;;  %p314_p1 = scmp.ne.s32.totalorder %s1623_s15, %s1619_s14 }
   0x7   : > { %p315_p2 = scmp.eq.s32.totalorder %s1401_s19, 1  ;;  %p320_p3 = scmp.ne.s32.totalorder %s1619_s14, %s1615_s13 }
   0x8   : > { %s2226_s21 = smov (%p37_p0, %s35_s21), 0  ;;  %p321_p5 = scmp.eq.s32.totalorder %s1402_s20, 1 }
   0x9   : > { %2215 = sst [smem:[#allocation5_spill]] %s2226_s21  ;;  %p1734_p4 = por %p315_p2, %p314_p1 }
   0xa   : > { %s299_s24 = ssub.s32 %s1631_s17, %s2226_s21  ;;  %p1405_p6 = scmp.ge.s32.totalorder %s1635_s18, 1 }
   0xb   : > { %p302_p7 = scmp.eq.s32.totalorder %s299_s24, 0  ;;  %p1741_p8 = por %p321_p5, %p320_p3 }
   0xc   : > { %p454_p9 = scmp.lt.s32.totalorder %s1635_s18, 3 }
   0xd   : > { %s1747_s26 = scalar_select %p302_p7, %s1623_s15, %s304_s22  }
   0xe   : > { %p455_p10 = pnand %p1405_p6, %p454_p9 }
   0xf   : > { %p561_p11 = scmp.lt.s32.totalorder (!%p455_p10), %s1627_s16, 1  ;;  %s552_s28 = sand.u32 (!%p455_p10), 1, %s1619_s14  }
  0x10   : > { %458 = sbr.rel (%p455_p10) target bundleno = 259 (0x103), region = 60 }
  0x15   : > { %v1465_v0 = vld [vmem:[%s2210_s8 + $0x38] sm:$0xff]  ;;  %v1464_v1 = vld [vmem:[%s2210_s8 + $0x30] sm:$0xff]  ;;  %s1757_s11 = scalar_select %p561_p11, %s1627_s16, 1  ;;  %v1762_v2 = vld [vmem:[%s2208_s6] sm:$0xff]  ;;  %vm753_vm0 = vcmask 1046528  }
  0x16   : > { %1144 = vmatpush.bf16.msra.mxu0 %v1465_v0  ;;  %1467 = vmatpush.bf16.msra.mxu1 %v1465_v0  ;;  %v1765_v3 = vperm.slane %v1762_v2, 3  ;;  %v1770_v4 = vperm.slane %v1762_v2, 0  ;;  %v1773_v5 = vperm.slane %v1762_v2, 2  ;;  %v1776_v6 = vperm.slane %v1762_v2, 5  ;;  %v1463_v7 = vld [vmem:[%s2210_s8 + $0x28] sm:$0xff]  ;;  %v1462_v33 = vld [vmem:[%s2210_s8 + $0x20] sm:$0xff] }
  0x17   : > { %1468 = vmatpush.bf16.msra.mxu2 %v1465_v0  ;;  %1469 = vmatpush.bf16.msra.mxu3 %v1465_v0  ;;  %s2214_s20 = smul.u32 144, %s1757_s11  ;;  %s1456_s22 = sshll.u32 %s1757_s11, 7  ;;  %v1799_v10 = vperm.slane %v1762_v2, 1  ;;  %v1802_v11 = vperm.slane %v1762_v2, 4  ;;  %v1805_v12 = vperm.slane %v1762_v2, 6  ;;  %v1461_v54 = vld [vmem:[%s2210_s8 + $0x18] sm:$0xff] }
  0x18   : > { %s1784_s30 = scalar_lea.vmem %s2206_s4, %s1456_s22  ;;  %s1493_s24 = smul.u32 72, %s1757_s11  ;;  %v1879_v58 = vperm.slane %v1762_v2, 7  ;;  %v1889_v63 = vld [vmem:[%s2208_s6 + $0x8] ss:$0 sm:$0xff] }
  0x19   : > { %s1791_s21 = scalar_lea.vmem %s2202_s0, %s2214_s20  ;;  %v667_v8 = vld [vmem:[%s1784_s30] sm:$0xff]  ;;  %v1796_v9 = vld [vmem:[%s1784_s30 + $0x10] sm:$0xff]  ;;  %s1457_s22 = sshll.u32 %s1757_s11, 6  ;;  %v668_v44 = vld [vmem:[%s1784_s30 + $0x8] sm:$0x1] }
  0x1a   : > { %1145 = vmatpush.bf16.msra.mxu0 %v1464_v1  ;;  %1470 = vmatpush.bf16.msra.mxu1 %v1464_v1  ;;  %v643_v13 = vld [vmem:[%s1791_s21] sm:$0xff]  ;;  %v644_v14 = vld [vmem:[%s1791_s21 + $0x8] sm:$0x1]  ;;  %v1811_v15 = vld [vmem:[%s1791_s21 + $0x10] sm:$0xff]  ;;  %v795_v16 = vmul.f32 %v1765_v3, %v667_v8  ;;  %v796_v17 = vmul.f32 %v1765_v3, %v1796_v9  ;;  %v1817_v18 = vmul.f32 %v1776_v6, %v667_v8  ;;  %s1824_s29 = scalar_lea.vmem %s2204_s2, %s1493_s24  ;;  %s1829_s20 = scalar_lea.vmem %s2207_s5, %s1457_s22 }
  0x1b   : > { %1471 = vmatpush.bf16.msra.mxu2 %v1464_v1  ;;  %1472 = vmatpush.bf16.msra.mxu3 %v1464_v1  ;;  %v1832_v19 = vld [vmem:[%s1791_s21 + $0x18] sm:$0x1]  ;;  %v1835_v20 = vld [vmem:[%s1791_s21 + $0x20] sm:$0xff]  ;;  %v1838_v21 = vld [vmem:[%s1791_s21 + $0x28] sm:$0x1]  ;;  %v695_v22 = vmul.f32 %v1770_v4, %v643_v13  ;;  %v696_v23 = vmul.f32 %v1770_v4, %v1811_v15  ;;  %v721_v24 = vmul.f32 %v1773_v5, %v643_v13  ;;  %s2104_s19 = sadd.s32 64, %s1493_s24 }
  0x1c   : > { %v722_v25 = vmul.f32 %v1773_v5, %v644_v14  ;;  %v659_v26 = vld [vmem:[%s1824_s29] sm:$0xff]  ;;  %v660_v27 = vld [vmem:[%s1824_s29 + $0x8] sm:$0xff]  ;;  %v1848_v28 = vld [vmem:[%s1824_s29 + $0x10] sm:$0xff]  ;;  %v697_v29 = vmul.f32 %v1770_v4, %v1835_v20  ;;  %v723_v30 = vmul.f32 %v1773_v5, %v1811_v15  ;;  %v724_v31 = vmul.f32 %v1773_v5, %v1832_v19  ;;  %s1577_s22 = scalar_lea.hbm %s2212_s10, 128 }
  0x1d   : > { %v725_v32 = vmul.f32 %v1773_v5, %v1835_v20  ;;  %v683_v34 = vld [vmem:[%s1829_s20] sm:$0xff]  ;;  %v704_v35 = vmul.f32 %v1799_v10, %v659_v26  ;;  %v705_v36 = vmul.f32 %v1799_v10, %v660_v27  ;;  %v706_v37 = vmul.f32 %v1799_v10, %v1848_v28  ;;  %v684_v39 = vld [vmem:[%s1829_s20 + $0x8] sm:$0xff]  ;;  %v670_v49 = vld [vmem:[%s1784_s30 + $0x18] sm:$0x1] }
  0x1e   : > { %1146 = vmatpush.bf16.msra.mxu0 %v1463_v7  ;;  %1473 = vmatpush.bf16.msra.mxu1 %v1463_v7  ;;  %v754_v38 = vrot.slane %v721_v24, 1  ;;  %v726_v40 = vmul.f32 %v1773_v5, %v1838_v21  ;;  %v755_v41 = vrot.slane %v722_v25, 1  ;;  %v757_v42 = vrot.slane %v723_v30, 1  ;;  %v1903_v24 = vld [vmem:[%s1791_s21 + $0x30] sm:$0xff]  ;;  %v1911_v30 = vld [vmem:[%s1791_s21 + $0x40] sm:$0xff] }
  0x1f   : > { %1474 = vmatpush.bf16.msra.mxu2 %v1463_v7  ;;  %1475 = vmatpush.bf16.msra.mxu3 %v1463_v7  ;;  %v758_v43 = vrot.slane %v724_v31, 1  ;;  %v712_v45 = vadd.f32 %v704_v35, %v695_v22  ;;  %v713_v46 = vadd.f32 %v705_v36, %v696_v23  ;;  %v714_v47 = vadd.f32 %v706_v37, %v697_v29  ;;  %v1922_v35 = vld [vmem:[%s1824_s29 + $0x20] sm:$0xff]  ;;  %v1927_v37 = vld [vmem:[%s1791_s21 + $0x38] sm:$0x1] }
  0x20   : > { %v760_v48 = vrot.slane %v725_v32, 1  ;;  %v756_v50 = vsel %vm753_vm0, %v754_v38, %v755_v41  ;;  %v761_v52 = vrot.slane %v726_v40, 1  ;;  %v812_v53 = vmul.f32 %v1802_v11, %v683_v34  ;;  %v1919_v34 = vld [vmem:[%s1824_s29 + $0x18] sm:$0xff] }
  0x21   : > { %v759_v51 = vsel %vm753_vm0, %v757_v42, %v758_v43  ;;  %v786_v55 = vadd.f32 %v756_v50, %v712_v45  ;;  %v813_v57 = vmul.f32 %v1802_v11, %v684_v39  ;;  %v830_v60 = vmul.f32 %v1776_v6, %v668_v44  ;;  %v1937_v43 = vld [vmem:[%s1791_s21 + $0x48] sm:$0x1]  ;;  %v673_v50 = vld [vmem:[%s1784_s30 + $0x30] sm:$0xff] }
  0x22   : > { %1147 = vmatpush.bf16.msra.mxu0 %v1462_v33  ;;  %1476 = vmatpush.bf16.msra.mxu1 %v1462_v33  ;;  %v787_v56 = vadd.f32 %v759_v51, %v713_v46  ;;  %v762_v59 = vsel %vm753_vm0, %v760_v48, %v761_v52  ;;  %v831_v61 = vmul.f32 %v1776_v6, %v1796_v9  ;;  %v861_v62 = vrot.slane %v1817_v18, 1  ;;  %v1460_v18 = vld [vmem:[%s2210_s8 + $0x10] sm:$0xff]  ;;  %v1947_v48 = vld [vmem:[%s2209_s7] ss:$0 sm:$0xff] }
  0x23   : > { %1477 = vmatpush.bf16.msra.mxu2 %v1462_v33  ;;  %1478 = vmatpush.bf16.msra.mxu3 %v1462_v33  ;;  %v1891_v0 = vadd.f32 %v762_v59, %v714_v47  ;;  %v803_v1 = vadd.f32 %v795_v16, %v786_v55  ;;  %v832_v7 = vmul.f32 %v1776_v6, %v670_v49  ;;  %v862_v8 = vrot.slane %v830_v60, 1  ;;  %v671_v49 = vld [vmem:[%s1784_s30 + $0x20] sm:$0xff]  ;;  %v685_v55 = vld [vmem:[%s1829_s20 + $0x10] sm:$0xff] }
  0x24   : > { %v804_v2 = vadd.f32 %v796_v17, %v787_v56  ;;  %v864_v13 = vrot.slane %v831_v61, 1  ;;  %v902_v9 = vmul.f32 %v1805_v12, %v1811_v15  ;;  %v903_v14 = vmul.f32 %v1805_v12, %v1835_v20  ;;  %v1458_v59 = vld [vmem:[%s2210_s8] sm:$0xff]  ;;  %v686_v61 = vld [vmem:[%s1829_s20 + $0x18] sm:$0xff] }
  0x25   : > { %v820_v16 = vadd.f32 %v812_v53, %v803_v1  ;;  %v865_v22 = vrot.slane %v832_v7, 1  ;;  %v919_v23 = vmul.f32 %v1879_v58, %v660_v27  ;;  %v863_v25 = vsel %vm753_vm0, %v861_v62, %v862_v8 }
  0x26   : > { %1148 = vmatpush.bf16.msra.mxu0 %v1461_v54  ;;  %1479 = vmatpush.bf16.msra.mxu1 %v1461_v54  ;;  %v821_v17 = vadd.f32 %v813_v57, %v804_v2  ;;  %v920_v26 = vmul.f32 %v1879_v58, %v1848_v28  ;;  %v936_v29 = vmul.f32 %v1889_v63, %v1811_v15 }
  0x27   : > { %1480 = vmatpush.bf16.msra.mxu2 %v1461_v54  ;;  %1481 = vmatpush.bf16.msra.mxu3 %v1461_v54  ;;  %v866_v31 = vsel %vm753_vm0, %v864_v13, %v865_v22  ;;  %v893_v32 = vadd.f32 %v863_v25, %v820_v16  ;;  %v937_v27 = vmul.f32 %v1889_v63, %v1832_v19  ;;  %v1459_v19 = vld [vmem:[%s2210_s8 + $0x8] sm:$0xff] }
  0x28   : > { %v938_v33 = vmul.f32 %v1889_v63, %v1835_v20  ;;  %v894_v36 = vadd.f32 %v866_v31, %v821_v17  ;;  %v939_v15 = vmul.f32 %v1889_v63, %v1838_v21  ;;  %v968_v28 = vrot.slane %v936_v29, 1 }
  0x29   : > { %v698_v38 = vmul.f32 %v1770_v4, %v1903_v24  ;;  %v910_v20 = vadd.f32 %v902_v9, %v893_v32  ;;  %v969_v39 = vrot.slane %v937_v27, 1  ;;  %v699_v21 = vmul.f32 %v1770_v4, %v1911_v30  ;;  %v674_v32 = vld [vmem:[%s1784_s30 + $0x38] sm:$0x1] }
  0x2a   : > { %1149 = vmatpush.bf16.msra.mxu0 %v1460_v18  ;;  %1482 = vmatpush.bf16.msra.mxu1 %v1460_v18  ;;  %v971_v40 = vrot.slane %v938_v33, 1  ;;  %v911_v41 = vadd.f32 %v903_v14, %v894_v36  ;;  %v972_v42 = vrot.slane %v939_v15, 1  ;;  %v707_v44 = vmul.f32 %v1799_v10, %v1919_v34 }
  0x2b   : > { %1483 = vmatpush.bf16.msra.mxu2 %v1460_v18  ;;  %1484 = vmatpush.bf16.msra.mxu3 %v1460_v18  ;;  %v708_v45 = vmul.f32 %v1799_v10, %v1922_v35  ;;  %v927_v46 = vadd.f32 %v919_v23, %v910_v20  ;;  %v970_v47 = vsel %vm753_vm0, %v968_v28, %v969_v39  ;;  %v672_v23 = vld [vmem:[%s1784_s30 + $0x28] sm:$0x1] }
  0x2c   : > { %v727_v51 = vmul.f32 %v1773_v5, %v1903_v24  ;;  %v728_v52 = vmul.f32 %v1773_v5, %v1927_v37  ;;  %v928_v53 = vadd.f32 %v920_v26, %v911_v41  ;;  %v973_v54 = vsel %vm753_vm0, %v971_v40, %v972_v42 }
  0x2d   : > { %v715_v56 = vadd.f32 %v707_v44, %v698_v38  ;;  %v716_v57 = vadd.f32 %v708_v45, %v699_v21  ;;  %v1000_v60 = vadd.f32 %v970_v47, %v927_v46  ;;  %v729_v62 = vmul.f32 %v1773_v5, %v1911_v30 }
  0x2e   : > { %1150 = vmatpush.bf16.msra.mxu0 %v1459_v19  ;;  %1485 = vmatpush.bf16.msra.mxu1 %v1459_v19  ;;  %v730_v1 = vmul.f32 %v1773_v5, %v1937_v43  ;;  %v763_v2 = vrot.slane %v727_v51, 1  ;;  %v1001_v7 = vadd.f32 %v973_v54, %v928_v53  ;;  %v764_v8 = vrot.slane %v728_v52, 1 }
  0x2f   : > { %1486 = vmatpush.bf16.msra.mxu2 %v1459_v19  ;;  %1487 = vmatpush.bf16.msra.mxu3 %v1459_v19  ;;  %v797_v13 = vmul.f32 %v1765_v3, %v671_v49  ;;  %v798_v9 = vmul.f32 %v1765_v3, %v673_v50  ;;  %v1012_v14 = vadd.f32 %v1947_v48, %v1000_v60  ;;  %v766_v18 = vrot.slane %v729_v62, 1  ;;  %v1998_v62 = vld [vmem:[%s1791_s21 + $0x60] sm:$0xff] }
  0x30   : > { %v767_v16 = vrot.slane %v730_v1, 1  ;;  %v814_v17 = vmul.f32 %v1802_v11, %v685_v55  ;;  %v1013_v22 = vadd.f32 %v1947_v48, %v1001_v7  ;;  %v765_v25 = vsel %vm753_vm0, %v763_v2, %v764_v8  ;;  %v2005_v8 = vld [vmem:[%s1824_s29 + $0x28] sm:$0xff] }
  0x31   : > { %v805_v26 = vadd.f32 %v797_v13, %v1891_v0  ;;  %v815_v29 = vmul.f32 %v1802_v11, %v686_v61  ;;  %vm1020_vm1 = vcmp.gt.f32.partialorder %v1012_v14, 0.0  ;;  %v1028_v31 = vmul.f32 0.1, %v1012_v14  ;;  %v2008_v13 = vld [vmem:[%s1824_s29 + $0x30] sm:$0xff] }
  0x32   : > { %1151 = vmatpush.bf16.msra.mxu0 %v1458_v59  ;;  %1488 = vmatpush.bf16.msra.mxu1 %v1458_v59  ;;  %v768_v27 = vsel %vm753_vm0, %v766_v18, %v767_v16  ;;  %v789_v33 = vadd.f32 %v765_v25, %v715_v56  ;;  %vm1021_vm2 = vcmp.gt.f32.partialorder %v1013_v22, 0.0  ;;  %v1029_v36 = vmul.f32 0.1, %v1013_v22  ;;  %v1990_v56 = vld [vmem:[%s1791_s21 + $0x50] sm:$0xff]  ;;  %v2020_v25 = vld [vmem:[%s1791_s21 + $0x68] sm:$0x1] }
  0x33   : > { %1489 = vmatpush.bf16.msra.mxu2 %v1458_v59  ;;  %1490 = vmatpush.bf16.msra.mxu3 %v1458_v59  ;;  %v1976_v15 = vadd.f32 %v768_v27, %v716_v57  ;;  %v822_v28 = vadd.f32 %v814_v17, %v805_v26  ;;  %v1036_v38 = vsel %vm1020_vm1, %v1012_v14, %v1028_v31  ;;  %v2013_v14 = vld [vmem:[%s1791_s21 + $0x58] sm:$0x1]  ;;  %v677_v27 = vld [vmem:[%s1784_s30 + $0x50] sm:$0xff] }
  0x34   : > { %v806_v19 = vadd.f32 %v798_v9, %v789_v33  ;;  %v833_v0 = vmul.f32 %v1776_v6, %v671_v49  ;;  %v834_v20 = vmul.f32 %v1776_v6, %v672_v23  ;;  %v1037_v39 = vsel %vm1021_vm2, %v1013_v22, %v1029_v36 }
  0x35   : > { %v1044_v40 = vpack.c.bf16 %v1036_v38, %v1036_v38  ;;  %v835_v21 = vmul.f32 %v1776_v6, %v673_v50  ;;  %v836_v41 = vmul.f32 %v1776_v6, %v674_v32  ;;  %v1045_v42 = vpack.c.bf16 %v1037_v39, %v1037_v39  ;;  %v675_v32 = vld [vmem:[%s1784_s30 + $0x40] sm:$0xff] }
  0x36   : > { %v823_v44 = vadd.f32 %v815_v29, %v806_v19  ;;  %v867_v45 = vrot.slane %v833_v0, 1  ;;  %v868_v46 = vrot.slane %v834_v20, 1  ;;  %v904_v49 = vmul.f32 %v1805_v12, %v1903_v24  ;;  %v687_v19 = vld [vmem:[%s1829_s20 + $0x20] sm:$0xff] }
  0x37   : > { %v1080_v47 = vunpack.c.l.b16 %v1044_v40  ;;  %v870_v51 = vrot.slane %v835_v21, 1  ;;  %v871_v52 = vrot.slane %v836_v41, 1  ;;  %v1081_v53 = vunpack.c.l.b16 %v1045_v42 }
  0x38   : > { %v869_v54 = vsel %vm753_vm0, %v867_v45, %v868_v46  ;;  %v905_v50 = vmul.f32 %v1805_v12, %v1911_v30  ;;  %v921_v55 = vmul.f32 %v1879_v58, %v1919_v34  ;;  %v922_v60 = vmul.f32 %v1879_v58, %v1922_v35 }
  0x39   : > { %v872_v57 = vsel %vm753_vm0, %v870_v51, %v871_v52  ;;  %v895_v59 = vadd.f32 %v869_v54, %v822_v28  ;;  %v940_v61 = vmul.f32 %v1889_v63, %v1903_v24  ;;  %v1088_v1 = vpack.c.b16 %v1081_v53, %v1080_v47  ;;  %v688_v51 = vld [vmem:[%s1829_s20 + $0x28] sm:$0xff] }
  0x3a   : > { %v896_v2 = vadd.f32 %v872_v57, %v823_v44  ;;  %v941_v7 = vmul.f32 %v1889_v63, %v1927_v37  ;;  %v942_v34 = vmul.f32 %v1889_v63, %v1911_v30  ;;  %v943_v35 = vmul.f32 %v1889_v63, %v1937_v43 }
  0x3b   : > { %v912_v9 = vadd.f32 %v904_v49, %v895_v59  ;;  %v974_v24 = vrot.slane %v940_v61, 1  ;;  %v700_v37 = vmul.f32 %v1770_v4, %v1990_v56  ;;  %1152 = vmatmul.bf16.vlgmr.msra.gmra.mxu0 %v1088_v1  ;;  %v701_v17 = vmul.f32 %v1770_v4, %v1998_v62 }
  0x3c   : > { %v913_v18 = vadd.f32 %v905_v50, %v896_v2  ;;  %v975_v16 = vrot.slane %v941_v7, 1  ;;  %v977_v30 = vrot.slane %v942_v34, 1  ;;  %v978_v23 = vrot.slane %v943_v35, 1  ;;  %v676_v50 = vld [vmem:[%s1784_s30 + $0x48] sm:$0x1] }
  0x3d   : > { %v929_v22 = vadd.f32 %v921_v55, %v912_v9  ;;  %v709_v43 = vmul.f32 %v1799_v10, %v2005_v8  ;;  %v710_v26 = vmul.f32 %v1799_v10, %v2008_v13  ;;  %v731_v33 = vmul.f32 %v1773_v5, %v1990_v56 }
  0x3e   : > { %v930_v29 = vadd.f32 %v922_v60, %v913_v18  ;;  %v976_v31 = vsel %vm753_vm0, %v974_v24, %v975_v16  ;;  %v732_v36 = vmul.f32 %v1773_v5, %v2013_v14  ;;  %v979_v28 = vsel %vm753_vm0, %v977_v30, %v978_v23  ;;  %v678_v60 = vld [vmem:[%s1784_s30 + $0x58] sm:$0x1] }
  0x3f   : > { %v1002_v38 = vadd.f32 %v976_v31, %v929_v22  ;;  %v717_v0 = vadd.f32 %v709_v43, %v700_v37  ;;  %v718_v20 = vadd.f32 %v710_v26, %v701_v17  ;;  %v733_v40 = vmul.f32 %v1773_v5, %v1998_v62 }
  0x40   : > { %v1003_v39 = vadd.f32 %v979_v28, %v930_v29  ;;  %v734_v21 = vmul.f32 %v1773_v5, %v2020_v25  ;;  %v769_v41 = vrot.slane %v731_v33, 1  ;;  %v770_v44 = vrot.slane %v732_v36, 1 }
  0x41   : > { %v1014_v42 = vadd.f32 %v1947_v48, %v1002_v38  ;;  %v799_v45 = vmul.f32 %v1765_v3, %v675_v32  ;;  %v800_v46 = vmul.f32 %v1765_v3, %v677_v27  ;;  %v772_v52 = vrot.slane %v733_v40, 1 }
  0x42   : > { %v1015_v47 = vadd.f32 %v1947_v48, %v1003_v39  ;;  %v773_v49 = vrot.slane %v734_v21, 1  ;;  %v816_v53 = vmul.f32 %v1802_v11, %v687_v19  ;;  %v771_v55 = vsel %vm753_vm0, %v769_v41, %v770_v44  ;;  %v2068_v19 = vld [vmem:[%s1791_s21 + $0x70] sm:$0xff] }
  0x43   : > { %vm1022_vm3 = vcmp.gt.f32.partialorder %v1014_v42, 0.0  ;;  %v1030_v54 = vmul.f32 0.1, %v1014_v42  ;;  %v807_v57 = vadd.f32 %v799_v45, %v1976_v15  ;;  %v791_v1 = vadd.f32 %v771_v55, %v717_v0  ;;  %v2071_v0 = vld [vmem:[%s1824_s29 + $0x38] sm:$0xff] }
  0x44   : > { %vm1023_vm4 = vcmp.gt.f32.partialorder %v1015_v47, 0.0  ;;  %v1031_v59 = vmul.f32 0.1, %v1015_v47  ;;  %v774_v61 = vsel %vm753_vm0, %v772_v52, %v773_v49  ;;  %v817_v34 = vmul.f32 %v1802_v11, %v688_v51 }
  0x45   : > { %v1038_v2 = vsel %vm1022_vm3, %v1014_v42, %v1030_v54  ;;  %v2050_v7 = vadd.f32 %v774_v61, %v718_v20  ;;  %v824_v9 = vadd.f32 %v816_v53, %v807_v57  ;;  %v808_v37 = vadd.f32 %v800_v46, %v791_v1  ;;  %v2082_v42 = vld [vmem:[%s1791_s21 + $0x78] sm:$0x1]  ;;  %v679_v46 = vld [vmem:[%s1784_s30 + $0x60] sm:$0xff]  ;;  %v689_v53 = vld [vmem:[%s1829_s20 + $0x30] sm:$0xff]  ;;  %s2218_s21 = smul.u32 144, %s1757_s11 }
  0x46   : > { %v1039_v35 = vsel %vm1023_vm4, %v1015_v47, %v1031_v59  ;;  %v1046_v24 = vpack.c.bf16 %v1038_v2, %v1038_v2  ;;  %v837_v18 = vmul.f32 %v1776_v6, %v675_v32  ;;  %v838_v15 = vmul.f32 %v1776_v6, %v676_v50  ;;  %v690_v50 = vld [vmem:[%s1829_s20 + $0x38] sm:$0xff]  ;;  %v680_v61 = vld [vmem:[%s1784_s30 + $0x68] sm:$0x1]  ;;  %s1466_s20 = sshll.u32 %s1627_s16, 6  ;;  %s1206_s16 = scalar_lea.sflag [#allocation3], %s552_s28 }
  0x47   : > { %v1047_v16 = vpack.c.bf16 %v1039_v35, %v1039_v35  ;;  %v839_v30 = vmul.f32 %v1776_v6, %v677_v27  ;;  %v840_v17 = vmul.f32 %v1776_v6, %v678_v60  ;;  %v825_v23 = vadd.f32 %v817_v34, %v808_v37  ;;  %s1453_s29 = sadd.s32 128, %s2218_s21  ;;  %s1219_s11 = scalar_lea.hbm %s2212_s10, %s1466_s20 }
  0x48   : > { %v1082_v22 = vunpack.c.l.b16 %v1046_v24  ;;  %v873_v43 = vrot.slane %v837_v18, 1  ;;  %v906_v26 = vmul.f32 %v1805_v12, %v1990_v56  ;;  %v874_v31 = vrot.slane %v838_v15, 1  ;;  %s2111_s27 = scalar_lea.vmem %s2203_s1, %s1453_s29  ;;  %s1406_s29 = sshll.u32 %s552_s28, 6 }
  0x49   : > { %v1083_v29 = vunpack.c.l.b16 %v1047_v16  ;;  %v876_v33 = vrot.slane %v839_v30, 1  ;;  %v877_v32 = vrot.slane %v840_v17, 1  ;;  %v907_v36 = vmul.f32 %v1805_v12, %v1998_v62 }
  0x4a   : > { %v923_v28 = vmul.f32 %v1879_v58, %v2005_v8  ;;  %v924_v27 = vmul.f32 %v1879_v58, %v2008_v13  ;;  %v944_v38 = vmul.f32 %v1889_v63, %v1990_v56  ;;  %v875_v39 = vsel %vm753_vm0, %v873_v43, %v874_v31 }
  0x4b   : > { %v1089_v20 = vpack.c.b16 %v1083_v29, %v1082_v22  ;;  %v878_v40 = vsel %vm753_vm0, %v876_v33, %v877_v32  ;;  %v945_v21 = vmul.f32 %v1889_v63, %v2013_v14  ;;  %v897_v8 = vadd.f32 %v875_v39, %v824_v9 }
  0x4c   : > { %v898_v13 = vadd.f32 %v878_v40, %v825_v23  ;;  %v946_v41 = vmul.f32 %v1889_v63, %v1998_v62  ;;  %v947_v56 = vmul.f32 %v1889_v63, %v2020_v25  ;;  %v980_v44 = vrot.slane %v944_v38, 1  ;;  %v681_v25 = vld [vmem:[%s1784_s30 + $0x70] sm:$0xff] }
  0x4d   : > { %1157 = vmatmul.bf16.vlgmr.msra.gmra.mxu1 %v1089_v20  ;;  %v981_v45 = vrot.slane %v945_v21, 1  ;;  %v702_v14 = vmul.f32 %v1770_v4, %v2068_v19  ;;  %v711_v47 = vmul.f32 %v1799_v10, %v2071_v0  ;;  %v914_v51 = vadd.f32 %v906_v26, %v897_v8  ;;  %v691_v26 = vld [vmem:[%s2111_s27] sm:$0xff] }
  0x4e   : > { %v915_v62 = vadd.f32 %v907_v36, %v898_v13  ;;  %v983_v52 = vrot.slane %v946_v41, 1  ;;  %v984_v49 = vrot.slane %v947_v56, 1  ;;  %v735_v4 = vmul.f32 %v1773_v5, %v2068_v19  ;;  %v692_v56 = vld [vmem:[%s2111_s27 + $0x8] sm:$0x1] }
  0x4f   : > { %v982_v54 = vsel %vm753_vm0, %v980_v44, %v981_v45  ;;  %v719_v55 = vadd.f32 %v711_v47, %v702_v14  ;;  %v736_v10 = vmul.f32 %v1773_v5, %v2082_v42  ;;  %v931_v57 = vadd.f32 %v923_v28, %v914_v51  ;;  %v682_v5 = vld [vmem:[%s1784_s30 + $0x78] sm:$0x1]  ;;  %s616_s30 = scalar_lea.vmem %s2205_s3, %s2104_s19  ;;  %s2153_s19 = scalar_lea.vmem [#allocation2], %s1406_s29 }
  0x50   : > { %v932_v59 = vadd.f32 %v924_v27, %v915_v62  ;;  %v985_v60 = vsel %vm753_vm0, %v983_v52, %v984_v49  ;;  %v801_v1 = vmul.f32 %v1765_v3, %v679_v46  ;;  %v775_v2 = vrot.slane %v735_v4, 1  ;;  %v693_v28 = vld [vmem:[%s616_s30] sm:$0xff]  ;;  %s1220_s24 = sshll.u32 %s2153_s19, 4  ;;  %s1222_s30 = sshll.u32 %s1219_s11, 4  ;;  %s1221_s24 = int_to_ptr.vmem [resolvable:$true] %s1220_s24  ;;  %s1223_s30 = int_to_ptr.hbm [resolvable:$true] %s1222_s30 }
  0x51   : > { %v776_v34 = vrot.slane %v736_v10, 1  ;;  %v802_v9 = vmul.f32 %v1765_v3, %v681_v25  ;;  %v818_v35 = vmul.f32 %v1802_v11, %v689_v53  ;;  %v1004_v24 = vadd.f32 %v982_v54, %v931_v57  ;;  %s1571_s12 = sshra.s32 %s1223_s30, 4  ;;  %s1572_s12 = int_to_ptr.hbm [resolvable:$true] %s1571_s12 }
  0x52   : > { %v1005_v37 = vadd.f32 %v985_v60, %v932_v59  ;;  %v809_v18 = vadd.f32 %v801_v1, %v2050_v7  ;;  %v819_v16 = vmul.f32 %v1802_v11, %v690_v50  ;;  %v841_v30 = vmul.f32 %v1776_v6, %v679_v46  ;;  %s1573_s21 = scalar_lea.hbm %s1572_s12, 64  ;;  %p1578_p1 = scmp.lt.s32.totalorder %s1572_s12, %s2212_s10 }
  0x53   : > { %v777_v15 = vsel %vm753_vm0, %v775_v2, %v776_v34  ;;  %v842_v3 = vmul.f32 %v1776_v6, %v680_v61  ;;  %v843_v17 = vmul.f32 %v1776_v6, %v681_v25  ;;  %v1016_v22 = vadd.f32 %v1947_v48, %v1004_v24  ;;  %p1574_p12 = scmp.ne.s32.totalorder %s1572_s12, %s1573_s21  ;;  %p1579_p2 = scmp.lt.s32.totalorder %s1577_s22, %s1573_s21 }
  0x54   : > { %v1017_v23 = vadd.f32 %v1947_v48, %v1005_v37  ;;  %v793_v43 = vadd.f32 %v777_v15, %v719_v55  ;;  %v826_v7 = vadd.f32 %v818_v35, %v809_v18  ;;  %v844_v11 = vmul.f32 %v1776_v6, %v682_v5 }
  0x55   : > { %v879_v29 = vrot.slane %v841_v30, 1  ;;  %v880_v31 = vrot.slane %v842_v3, 1  ;;  %v882_v33 = vrot.slane %v843_v17, 1  ;;  %vm1024_vm5 = vcmp.gt.f32.partialorder %v1016_v22, 0.0  ;;  %p1575_p13 = pnand %p1574_p12, %p1734_p4  ;;  %p1580_p3 = por %p1579_p2, %p1578_p1 }
  0x56   : > { %vm1025_vm6 = vcmp.gt.f32.partialorder %v1017_v23, 0.0  ;;  %v1032_v32 = vmul.f32 0.1, %v1016_v22  ;;  %v1033_v36 = vmul.f32 0.1, %v1017_v23  ;;  %v810_v27 = vadd.f32 %v802_v9, %v793_v43 }
  0x57   : > { %v881_v38 = vsel %vm753_vm0, %v879_v29, %v880_v31  ;;  %v883_v20 = vrot.slane %v844_v11, 1  ;;  %v908_v39 = vmul.f32 %v1805_v12, %v2068_v19  ;;  %v909_v6 = vmul.f32 %v1805_v12, %v691_v26  ;;  %p1576_p0 = pneg %p1575_p13 }
  0x58   : > { %v1040_v40 = vsel %vm1024_vm5, %v1016_v22, %v1032_v32  ;;  %v1041_v21 = vsel %vm1025_vm6, %v1017_v23, %v1033_v36  ;;  %v899_v8 = vadd.f32 %v881_v38, %v826_v7  ;;  %v827_v44 = vadd.f32 %v819_v16, %v810_v27  ;;  %v1556_v16 = vld [vmem:[%s2211_s9] ss:$0 sm:$0xff] }
  0x59   : > { %v1048_v13 = vpack.c.bf16 %v1040_v40, %v1040_v40  ;;  %v1049_v41 = vpack.c.bf16 %v1041_v21, %v1041_v21  ;;  %v884_v45 = vsel %vm753_vm0, %v882_v33, %v883_v20  ;;  %v925_v14 = vmul.f32 %v1879_v58, %v2071_v0  ;;  %p1581_p5 = pnand %p1580_p3, %p1576_p0 }
  0x5a   : > { %v916_v46 = vadd.f32 %v908_v39, %v899_v8  ;;  %v926_v47 = vmul.f32 %v1879_v58, %v693_v28  ;;  %v948_v51 = vmul.f32 %v1889_v63, %v2068_v19  ;;  %v900_v49 = vadd.f32 %v884_v45, %v827_v44 }
  0x5b   : > { %v1084_v62 = vunpack.c.l.b16 %v1048_v13  ;;  %v1085_v52 = vunpack.c.l.b16 %v1049_v41  ;;  %v949_v12 = vmul.f32 %v1889_v63, %v2082_v42  ;;  %v950_v53 = vmul.f32 %v1889_v63, %v691_v26 }
  0x5c   : > { %v933_v25 = vadd.f32 %v925_v14, %v916_v46  ;;  %v951_v54 = vmul.f32 %v1889_v63, %v692_v56  ;;  %v986_v50 = vrot.slane %v948_v51, 1  ;;  %v917_v4 = vadd.f32 %v909_v6, %v900_v49 }
  0x5d   : > { %v1090_v55 = vpack.c.b16 %v1085_v52, %v1084_v62  ;;  %v987_v0 = vrot.slane %v949_v12, 1  ;;  %v989_v10 = vrot.slane %v950_v53, 1 }
  0x5e   : > { %v990_v58 = vrot.slane %v951_v54, 1  ;;  %v934_v57 = vadd.f32 %v926_v47, %v917_v4 }
  0x5f   : > { %1162 = vmatmul.bf16.vlgmr.msra.gmra.mxu2 %v1090_v55  ;;  %v988_v19 = vsel %vm753_vm0, %v986_v50, %v987_v0 }
  0x60   : > { %v991_v59 = vsel %vm753_vm0, %v989_v10, %v990_v58  ;;  %v1006_v60 = vadd.f32 %v988_v19, %v933_v25 }
  0x61   : > { %v1007_v42 = vadd.f32 %v991_v59, %v934_v57 }
  0x62   : > { %v1018_v61 = vadd.f32 %v1947_v48, %v1006_v60 }
  0x63   : > { %v1019_v63 = vadd.f32 %v1947_v48, %v1007_v42 }
  0x64   : > { %vm1026_vm7 = vcmp.gt.f32.partialorder %v1018_v61, 0.0  ;;  %v1034_v1 = vmul.f32 0.1, %v1018_v61 }
  0x65   : > { %vm1027_vm8 = vcmp.gt.f32.partialorder %v1019_v63, 0.0  ;;  %v1035_v2 = vmul.f32 0.1, %v1019_v63 }
  0x66   : > { %v1042_v34 = vsel %vm1026_vm7, %v1018_v61, %v1034_v1 }
  0x67   : > { %v1043_v9 = vsel %vm1027_vm8, %v1019_v63, %v1035_v2  ;;  %v1050_v35 = vpack.c.bf16 %v1042_v34, %v1042_v34 }
  0x68   : > { %v1051_v24 = vpack.c.bf16 %v1043_v9, %v1043_v9 }
  0x69   : > { %v1086_v37 = vunpack.c.l.b16 %v1050_v35 }
  0x6a   : > { %v1087_v5 = vunpack.c.l.b16 %v1051_v24 }
  0x6c   : > { %v1091_v18 = vpack.c.b16 %v1087_v5, %v1086_v37 }
  0x6e   : > { %1167 = vmatmul.bf16.vlgmr.msra.gmra.mxu3 %v1091_v18 }
  0xb8   : > { %v1153_v48 = vpop.f32.mrf.mxu0 }
  0xb9   : > { %v1154_v15 = vadd.f32 %v1556_v16, %v1153_v48 }
  0xbb   : > { %vm1173_vm9 = vcmp.gt.f32.partialorder %v1154_v15, 0.0  ;;  %v1181_v30 = vmul.f32 0.1, %v1154_v15 }
  0xbd   : > { %v1189_v3 = vsel %vm1173_vm9, %v1154_v15, %v1181_v30 }
  0xbe   : > { %1197 = vst [vmem:[%s2153_s19] sm:$0xff] %v1189_v3 }
  0xc0   : > { %v1155_v7 = vpop.f32.mrf.mxu0 }
  0xc1   : > { %v1156_v11 = vadd.f32 %v1556_v16, %v1155_v7 }
  0xc3   : > { %vm1174_vm11 = vcmp.gt.f32.partialorder %v1156_v11, 0.0  ;;  %v1182_v31 = vmul.f32 0.1, %v1156_v11 }
  0xc5   : > { %v1190_v32 = vsel %vm1174_vm11, %v1156_v11, %v1182_v31 }
  0xc6   : > { %1198 = vst [vmem:[%s2153_s19 + $0x8] sm:$0xff] %v1190_v32 }
  0xca   : > { %v1158_v17 = vpop.f32.mrf.mxu1 }
  0xcb   : > { %v1159_v22 = vadd.f32 %v1556_v16, %v1158_v17 }
  0xcd   : > { %vm1175_vm10 = vcmp.gt.f32.partialorder %v1159_v22, 0.0  ;;  %v1183_v23 = vmul.f32 0.1, %v1159_v22 }
  0xcf   : > { %v1191_v43 = vsel %vm1175_vm10, %v1159_v22, %v1183_v23 }
  0xd0   : > { %1199 = vst [vmem:[%s2153_s19 + $0x10] sm:$0xff] %v1191_v43 }
  0xd2   : > { %v1160_v26 = vpop.f32.mrf.mxu1 }
  0xd3   : > { %v1161_v29 = vadd.f32 %v1556_v16, %v1160_v26 }
  0xd5   : > { %vm1176_vm12 = vcmp.gt.f32.partialorder %v1161_v29, 0.0  ;;  %v1184_v33 = vmul.f32 0.1, %v1161_v29 }
  0xd7   : > { %v1192_v36 = vsel %vm1176_vm12, %v1161_v29, %v1184_v33 }
  0xd8   : > { %1200 = vst [vmem:[%s2153_s19 + $0x18] sm:$0xff] %v1192_v36 }
  0xe2   : > { %v1163_v28 = vpop.f32.mrf.mxu2 }
  0xe3   : > { %v1164_v27 = vadd.f32 %v1556_v16, %v1163_v28 }
  0xe5   : > { %vm1177_vm13 = vcmp.gt.f32.partialorder %v1164_v27, 0.0  ;;  %v1185_v38 = vmul.f32 0.1, %v1164_v27 }
  0xe7   : > { %v1193_v20 = vsel %vm1177_vm13, %v1164_v27, %v1185_v38 }
  0xe8   : > { %1201 = vst [vmem:[%s2153_s19 + $0x20] sm:$0xff] %v1193_v20 }
  0xea   : > { %v1165_v39 = vpop.f32.mrf.mxu2 }
  0xeb   : > { %v1166_v40 = vadd.f32 %v1556_v16, %v1165_v39 }
  0xed   : > { %vm1178_vm14 = vcmp.gt.f32.partialorder %v1166_v40, 0.0  ;;  %v1186_v21 = vmul.f32 0.1, %v1166_v40 }
  0xef   : > { %v1194_v8 = vsel %vm1178_vm14, %v1166_v40, %v1186_v21 }
  0xf0   : > { %1202 = vst [vmem:[%s2153_s19 + $0x28] sm:$0xff] %v1194_v8 }
  0xf1   : > { %v1168_v6 = vpop.f32.mrf.mxu3 }
  0xf2   : > { %v1169_v13 = vadd.f32 %v1556_v16, %v1168_v6 }
  0xf4   : > { %vm1179_vm15 = vcmp.gt.f32.partialorder %v1169_v13, 0.0  ;;  %v1187_v41 = vmul.f32 0.1, %v1169_v13 }
  0xf6   : > { %v1195_v56 = vsel %vm1179_vm15, %v1169_v13, %v1187_v41 }
  0xf7   : > { %1203 = vst [vmem:[%s2153_s19 + $0x30] sm:$0xff] %v1195_v56 }
  0xf9   : > { %v1170_v44 = vpop.f32.mrf.mxu3 }
  0xfa   : > { %v1171_v45 = vadd.f32 %v1556_v16, %v1170_v44 }
  0xfc   : > { %vm1180_vm0 = vcmp.gt.f32.partialorder %v1171_v45, 0.0  ;;  %v1188_v46 = vmul.f32 0.1, %v1171_v45 }
  0xfe   : > { %v1196_v14 = vsel %vm1180_vm0, %v1171_v45, %v1188_v46 }
  0xff   : > { %1204 = vst [vmem:[%s2153_s19 + $0x38] sm:$0xff] %v1196_v14 }
 0x100   : > { %1584 = shalt.err (!%p1581_p5)
}
 0x101   : > { %s1637_s28 = smov 128   ;;  %s1638_s19 = smov 8  }
 0x102   : > { %1495 = dma.vmem_to_hbm [thread:$0]  (%p1734_p4), %s1221_s24, 1024, %s1223_s30, %s1206_s16, %s1637_s28, %s1637_s28, %s1638_s19  }
 0x103 PF: > { %p1503_p6 = scmp.ge.s32.totalorder %s1635_s18, 2  ;;  %s1237_s29 = sand.u32 1, %s1615_s13  }
 0x104   : > { %s1238_s20 = scalar_lea.sflag [#allocation3], %s1237_s29 }
 0x105   : > { %p1498_p7 = pnand %p1503_p6, %p1741_p8 }
 0x107   : > { %p1499_p9 = pneg %p1498_p7 }
 0x109   : > { %1610 = dma.done.wait (%p1499_p9), %s1238_s20, 1024  }
 0x10a   : > { %1612 = vsyncadd (%p1499_p9), %s1238_s20, 4294966272  ;;  %s23_s18 = sadd.s32 1, %s1635_s18   ;;  %s2219_s23 = sld [smem:[#allocation5_spill]] }
 0x10b   : > { %p20_p10 = scmp.ge.s32.totalorder %s23_s18, 4   ;;  %s2220_s13 = smov %s1619_s14 }
 0x10c   : > { %s2221_s14 = smov %s1623_s15  ;;  %s2222_s15 = smov %s1747_s26 }
 0x10d   : > { %s2223_s16 = smov %s1631_s17  ;;  %22 = sbr.rel (!%p20_p10) target bundleno = 4 (0x4), region = 110 }
 0x110   : > { %s2224_s17 = smov %s2219_s23 }
 0x112   :  { %1244 = vsyncpa [#allocation3], 1 }
 0x113   :  { %1246 = vsyncpa [#allocation3 + $0x1], 1 }

</bundles_post_ra>
